<compile_context>
chip_gen: v6e
topology: v6e:2x2x1
jax: 0.10.0
libtpu: 0.0.40
codegen_flags: <defaults>
</compile_context>

<pallas_src>
import jax
import jax.numpy as jnp
from jax.experimental import pallas as pl
from jax.experimental.pallas import tpu as pltpu

_MIN_LANES = 128      # lane width of a vreg
_SUBLANE = 8          # sublane count; row blocks must be a multiple of this
                      # (or equal the full row extent)


def _swish_kernel(x_ref, o_ref):
    # swish(x) = x * sigmoid(x); sigmoid(x) == 0.5 * (tanh(0.5*x) + 1)
    # -> a single EUP transcendental per element, computed in f32.
    xf = x_ref[...].astype(jnp.float32)
    o_ref[...] = (xf * 0.5 * (jnp.tanh(0.5 * xf) + 1.0)).astype(o_ref.dtype)


def _tile_byte_budget():
    """Per-buffer VMEM tile budget.  Double-buffered in+out => 4x this."""
    kind = ""
    try:
        kind = jax.devices()[0].device_kind.lower()
    except Exception:
        pass
    # v5e's default scoped VMEM is only 16 MiB -> keep the 4x footprint at 8 MiB.
    if "v5 lite" in kind or "v5e" in kind or "v5lite" in kind:
        return 2 * 1024 * 1024
    # v6e / v7x: 4 MiB tiles -> 16 MiB double-buffered footprint, under the
    # 32 MiB default scoped VMEM and far under physical VMEM (64/128 MiB).
    return 4 * 1024 * 1024


def _pick_tile_rows(rows, lane_width, itemsize, budget_bytes):
    """Largest row tile (multiple of 8, ideally 32) whose tile fits the budget."""
    max_rows = max(_SUBLANE, budget_bytes // (lane_width * itemsize))
    if max_rows >= 32:
        max_rows = (max_rows // 32) * 32   # keep bf16/int8 sublane packing aligned
    else:
        max_rows = (max_rows // _SUBLANE) * _SUBLANE
    # If rows < max_rows the block equals the full row extent, which needs no
    # 8-alignment; otherwise max_rows is a multiple of 8 by construction.
    return min(max_rows, rows)


def _maybe_split_for_two_cores(tr, rows):
    """Guarantee >= 2 grid steps when possible so v7x's 2 TCs both get work."""
    if tr >= rows and rows >= 2 * _SUBLANE:
        half = pl.cdiv(rows, 2)
        tr = ((half + _SUBLANE - 1) // _SUBLANE) * _SUBLANE
    return tr


def _pallas_swish_2d(x2d, tr):
    rows, lw = x2d.shape
    grid = (pl.cdiv(rows, tr),)
    return pl.pallas_call(
        _swish_kernel,
        out_shape=jax.ShapeDtypeStruct((rows, lw), x2d.dtype),
        grid_spec=pltpu.PrefetchScalarGridSpec(
            num_scalar_prefetch=0,
            grid=grid,
            in_specs=[pl.BlockSpec((tr, lw), lambda i: (i, 0))],
            out_specs=pl.BlockSpec((tr, lw), lambda i: (i, 0)),
        ),
        compiler_params=pltpu.CompilerParams(
            dimension_semantics=("parallel",),
        ),
    )(x2d)


def swish(x):
    """Elementwise swish via Pallas. Works for any input shape / float dtype."""
    orig_shape = x.shape
    orig_dtype = x.dtype
    n = x.size
    if n == 0:  # zero-length grid guard
        return x

    itemsize = jnp.dtype(orig_dtype).itemsize
    budget = _tile_byte_budget()

    # ---------------- Fast path: last dim already lane-aligned ----------------
    # Collapse only the leading dims (free reshape, no HBM relayout) and keep
    # the original last dim as the lane width.
    if x.ndim >= 1:
        last = orig_shape[-1]
        if (last >= _MIN_LANES and last % _MIN_LANES == 0
                and last * itemsize * _SUBLANE <= budget):
            lw = last
            rows = n // lw
            x2d = x.reshape(rows, lw)
            tr = _pick_tile_rows(rows, lw, itemsize, budget)
            tr = _maybe_split_for_two_cores(tr, rows)
            out2d = _pallas_swish_2d(x2d, tr)
            return out2d.reshape(orig_shape)

    # ---------------- Flat fallback path ----------------
    # Lane width: widest power-of-two multiple of 128 that divides the flat
    # length exactly -> no padding pass.  Truly ragged sizes pad the flat tail
    # up to one lane row (swish(0) == 0, tail sliced off afterwards).
    lw = None
    cand = 1024
    while cand >= _MIN_LANES:
        if n % cand == 0:
            lw = cand
            break
        cand //= 2

    x_flat = jnp.ravel(x)
    if lw is None:
        lw = 1024
        x_flat = jnp.pad(x_flat, (0, (-n) % lw))
    n_pad = x_flat.shape[0]

    rows = n_pad // lw
    x2d = x_flat.reshape(rows, lw)

    tr = _pick_tile_rows(rows, lw, itemsize, budget)
    tr = _maybe_split_for_two_cores(tr, rows)

    out2d = _pallas_swish_2d(x2d, tr)

    out_flat = out2d.reshape(-1)
    if n_pad != n:
        out_flat = out_flat[:n]
    return out_flat.reshape(orig_shape)


if __name__ == "__main__":
    key = jax.random.PRNGKey(0)
    k1, k2, k3, k4 = jax.random.split(key, 4)

    # NCHW-style activation tensor (2048 elems -> flat, pad-free path).
    x1 = jax.random.normal(k1, (2, 4, 16, 16), dtype=jnp.float32)
    y1 = swish(x1)
    jax.block_until_ready(y1)
    ref1 = x1 * jax.nn.sigmoid(x1)
    assert y1.shape == x1.shape and y1.dtype == x1.dtype
    assert jnp.allclose(y1, ref1, atol=1e-6, rtol=1e-6)

    # Lane-aligned last dim (256) -> fast path, no relayout.
    x2 = jax.random.normal(k2, (2, 8, 256), dtype=jnp.float32)
    y2 = swish(x2)
    jax.block_until_ready(y2)
    ref2 = x2 * jax.nn.sigmoid(x2)
    assert y2.shape == x2.shape and y2.dtype == x2.dtype
    assert jnp.allclose(y2, ref2, atol=1e-6, rtol=1e-6)

    # bf16 activations on the fast path (dtype-scaled tile rows).
    x3 = jax.random.normal(k3, (4, 128), dtype=jnp.bfloat16)
    y3 = swish(x3)
    jax.block_until_ready(y3)
    x3f = x3.astype(jnp.float32)
    ref3 = x3f * jax.nn.sigmoid(x3f)
    assert y3.shape == x3.shape and y3.dtype == x3.dtype
    assert jnp.allclose(y3.astype(jnp.float32), ref3, atol=2e-2, rtol=2e-2)

    # Ragged size (105 elems) exercising the pad-and-slice fallback path.
    x4 = jax.random.normal(k4, (3, 5, 7), dtype=jnp.float32)
    y4 = swish(x4)
    jax.block_until_ready(y4)
    ref4 = x4 * jax.nn.sigmoid(x4)
    assert y4.shape == x4.shape and y4.dtype == x4.dtype
    assert jnp.allclose(y4, ref4, atol=1e-6, rtol=1e-6)

    print("KERNEL_OK")
</pallas_src>

<mosaic_0001>
module attributes {stable_mosaic.version = 11 : i64} {
  func.func @_swish_kernel(%arg0: i32, %arg1: memref<2x1024xf32, #tpu.memory_space<vmem>>, %arg2: memref<2x1024xf32, #tpu.memory_space<vmem>>) attributes {dimension_semantics = [#tpu.dimension_semantics<parallel>], iteration_bounds = array<i64: 1>, scalar_prefetch = 0 : i64, scratch_operands = 0 : i64, tpu.core_type = #tpu.core_type<tc>, window_params = [{transform_indices = @transform_0, window_bounds = array<i64: 2, 1024>}, {transform_indices = @transform_1, window_bounds = array<i64: 2, 1024>}]} {
    %c0 = arith.constant 0 : index
    %c0_0 = arith.constant 0 : index
    %0 = vector.load %arg1[%c0, %c0_0] : memref<2x1024xf32, #tpu.memory_space<vmem>>, vector<2x1024xf32>
    %cst = arith.constant 5.000000e-01 : f32
    %1 = vector.broadcast %cst : f32 to vector<2x1024xf32>
    %2 = arith.mulf %0, %1 : vector<2x1024xf32>
    %cst_1 = arith.constant 5.000000e-01 : f32
    %3 = vector.broadcast %cst_1 : f32 to vector<2x1024xf32>
    %4 = arith.mulf %3, %0 : vector<2x1024xf32>
    %5 = math.tanh %4 : vector<2x1024xf32>
    %cst_2 = arith.constant 1.000000e+00 : f32
    %6 = vector.broadcast %cst_2 : f32 to vector<2x1024xf32>
    %7 = arith.addf %5, %6 : vector<2x1024xf32>
    %8 = arith.mulf %2, %7 : vector<2x1024xf32>
    %c0_3 = arith.constant 0 : index
    %c0_4 = arith.constant 0 : index
    %9 = vector.load %arg2[%c0_3, %c0_4] : memref<2x1024xf32, #tpu.memory_space<vmem>>, vector<2x1024xf32>
    tpu.vector_store %arg2[%c0_3, %c0_4], %8 {strides = array<i32>} : memref<2x1024xf32, #tpu.memory_space<vmem>>, vector<2x1024xf32>,
    return
  }
  func.func @transform_0(%arg0: i32) -> (i32, i32) {
    %c0_i32 = arith.constant 0 : i32
    %c0_i32_0 = arith.constant 0 : i32
    return %arg0, %c0_i32 : i32, i32
  }
  func.func @transform_1(%arg0: i32) -> (i32, i32) {
    %c0_i32 = arith.constant 0 : i32
    %c0_i32_0 = arith.constant 0 : i32
    return %arg0, %c0_i32 : i32, i32
  }
}

</mosaic_0001>

<bundles_post_ra>
// kernel: tpu_custom_call.1
= control target key start
LH: loop header
LB: loop body
LE: loop exit
PB: predicated region body
PF: predicated region fallthrough
CT: control target
= control target key end

     0   :  { %6 = vsyncpa [#allocation3], 0  ;;  %s116_s0 = inlined_call_operand.hbm [shape: f32[2,1024], index: 0, kind: input, shape index: {}]   ;;  %s117_s1 = inlined_call_operand.hbm [shape: f32[2,1024], index: 1, kind: output, shape index: {}]  }
   0x1   :  { %7 = vsyncpa [#allocation4], 0  ;;  %s98_s6 = smov [#allocation2]  }
   0x2   :  { %s14_s7 = sshll.u32 %s98_s6, 4  ;;  %s15_s7 = int_to_ptr.vmem [resolvable:$true] %s14_s7 }
   0x3   :  { %s62_s8 = scalar_lea.vmem %s15_s7, 256  ;;  %p67_p1 = scmp.lt.s32.totalorder %s15_s7, %s15_s7 }
   0x4   :  { %p63_p0 = scmp.ne.s32.totalorder %s15_s7, %s62_s8  ;;  %p68_p2 = scmp.lt.s32.totalorder %s62_s8, %s62_s8 }
   0x6   :  { %p69_p3 = por %p68_p2, %p67_p1 }
   0x8   :  { %p70_p4 = pnand %p69_p3, %p63_p0 }
   0xa   :  { %73 = shalt.err (!%p70_p4)
}
   0xb   :  { %17 = dma.hbm_to_vmem [thread:$0]  %s116_s0, 256, %s15_s7, [#allocation3]  }
   0xc   :  { %94 = dma.done.wait [#allocation3], 256  }
   0xd   :  { %95 = vsyncadd [#allocation3], 4294967040  ;;  %v21_v0 = vld [vmem:[#allocation2] sm:$0xff]  ;;  %v22_v1 = vld [vmem:[#allocation2 + $0x8] sm:$0xff]  ;;  %s99_s11 = smov [#allocation5]  }
   0xe   :  { %v23_v2 = vmul.f32 0.5, %v21_v0  ;;  %v24_v3 = vmul.f32 0.5, %v22_v1  ;;  %s39_s12 = sshll.u32 %s99_s11, 4  ;;  %s40_s12 = int_to_ptr.vmem [resolvable:$true] %s39_s12 }
   0xf   :  { %s74_s0 = scalar_lea.vmem %s40_s12, 256  ;;  %p79_p6 = scmp.lt.s32.totalorder %s40_s12, %s40_s12 }
  0x10   :  { %50 = vtanh.f32 %v23_v2  ;;  %p75_p5 = scmp.ne.s32.totalorder %s40_s12, %s74_s0  ;;  %p80_p7 = scmp.lt.s32.totalorder %s74_s0, %s74_s0 }
  0x11   :  { %52 = vtanh.f32 %v24_v3 }
  0x12   :  { %p81_p8 = por %p80_p7, %p79_p6 }
  0x14   :  { %p82_p9 = pnand %p81_p8, %p75_p5 }
  0x1d   :  { %v51_v4 = vpop.eup %50 }
  0x1e   :  { %v53_v5 = vpop.eup %52  ;;  %v27_v6 = vadd.f32 1.0, %v51_v4 }
  0x1f   :  { %v28_v7 = vadd.f32 1.0, %v53_v5 }
  0x20   :  { %v29_v8 = vmul.f32 %v27_v6, %v23_v2 }
  0x21   :  { %v30_v9 = vmul.f32 %v28_v7, %v24_v3 }
  0x22   :  { %31 = vst [vmem:[#allocation5] sm:$0xff] %v29_v8 }
  0x23   :  { %32 = vst [vmem:[#allocation5 + $0x8] sm:$0xff] %v30_v9 }
  0x24   :  { %85 = shalt.err (!%p82_p9)
}
  0x25   :  { %42 = dma.vmem_to_hbm [thread:$0]  %s40_s12, 256, %s117_s1, [#allocation4]  }
  0x26   :  { %96 = dma.done.wait [#allocation4], 256  }
  0x27   :  { %97 = vsyncadd [#allocation4], 4294967040 }
  0x28   :  { %46 = vsyncpa [#allocation3], 1 }
  0x29   :  { %47 = vsyncpa [#allocation4], 1 }

</bundles_post_ra>
